<compile_context>
chip_gen: v7x
topology: tpu7x:2x2x1
jax: 0.10.0
libtpu: 0.0.40
codegen_flags: <defaults>
</compile_context>

<pallas_src>
import functools

import jax
import jax.numpy as jnp
from jax.experimental import pallas as pl
from jax.experimental.pallas import tpu as pltpu


def _cdiv(a, b):
    return -(-a // b)


def _round_down(a, b):
    return (a // b) * b


def _vmem_capacity_bytes():
    try:
        info = pltpu.get_tpu_info()
        for name in ("vmem_capacity_bytes", "vmem_size_bytes", "vmem_bytes"):
            v = getattr(info, name, None)
            if v:
                return int(v)
    except Exception:
        pass
    return 64 << 20  # conservative (v7x per-TC); safe on v5e/v6e too


def _focal_kernel(logits_ref, target_ref, alpha_ref, out_ref, acc_ref, *,
                  gamma, ignore_index, nbt, hw, bt_tile, hw_tile, n_hw_inner):
    i = pl.program_id(0)    # bt block          (parallel)
    o = pl.program_id(1)    # hw outer block    (parallel)
    ii = pl.program_id(2)   # hw inner block    (arbitrary / reduction)

    @pl.when(ii == 0)
    def _():
        acc_ref[...] = jnp.zeros_like(acc_ref)

    x = logits_ref[...].astype(jnp.float32)      # (bt, K, hw)
    t = target_ref[...]                          # (bt, 1, hw) int32
    alpha = alpha_ref[...].astype(jnp.float32)   # (1, K, 1)
    k = x.shape[1]

    # log-softmax over the class (sublane) axis.
    m = jnp.max(x, axis=1, keepdims=True)        # (bt, 1, hw)
    z = x - m
    lse = jnp.log(jnp.sum(jnp.exp(z), axis=1, keepdims=True))

    # "Gather" z / alpha at the target class: small (1,K,1) class iota +
    # boolean select (no full-tile iota, no float one-hot).
    cls = jax.lax.broadcasted_iota(jnp.int32, (1, k, 1), 1)
    hit = cls == t                                              # (bt, K, hw) bool
    zt = jnp.sum(jnp.where(hit, z, 0.0), axis=1, keepdims=True)     # z at target
    at = jnp.sum(jnp.where(hit, alpha, 0.0), axis=1, keepdims=True)  # alpha at target

    logpt = zt - lse                             # (bt, 1, hw)
    pt = jnp.exp(logpt)
    w = jnp.maximum(1.0 - pt, 0.0)               # clamp: pt may exceed 1 by ULPs

    g = float(gamma)
    if g == 0.0:
        focal = jnp.ones_like(w)
    elif g.is_integer() and 0.0 < g <= 8.0:
        # integer-power expansion: no EUP pow, no NaN from tiny negatives
        focal = w
        for _ in range(int(g) - 1):
            focal = focal * w
    else:
        focal = jnp.power(w, g)

    loss = -(focal * at) * logpt                 # (bt, 1, hw)

    # Validity mask: global bounds (edge blocks are read partially OOB since the
    # wrapper no longer pads the logits), valid class range, ignore_index.
    hw_start = (o * n_hw_inner + ii) * hw_tile
    lane = jax.lax.broadcasted_iota(jnp.int32, (bt_tile, 1, hw_tile), 2)
    row = jax.lax.broadcasted_iota(jnp.int32, (bt_tile, 1, hw_tile), 0)
    valid = ((hw_start + lane) < hw) & ((i * bt_tile + row) < nbt)
    valid = valid & (t >= 0) & (t < k)   # NOTE: genuinely OOB targets contribute 0
    if ignore_index is not None:
        valid = valid & (t != ignore_index)

    # Elementwise accumulation (pure VPU); scalar reduce deferred to last step.
    acc_ref[...] += jnp.where(valid, loss, 0.0)

    @pl.when(ii == pl.num_programs(2) - 1)
    def _():
        out_ref[...] = jnp.sum(acc_ref[...], keepdims=True)   # (1, 1, 1)


def focal_loss_pallas(logits, target, alpha=None, *, gamma=2.0,
                      size_average=True, ignore_index=None,
                      bt_tile=8, hw_tile=None):
    """logits: (B,T,K,H,W) float32/bf16; target: (B,T,H,W) int; alpha: None|scalar|(K,)."""
    B, T, K, H, W = logits.shape
    NBT, HW = B * T, H * W

    # Native layout: only free reshapes, no transpose, no pad copy of logits.
    x = logits.reshape(NBT, K, HW)
    t = target.reshape(NBT, 1, HW).astype(jnp.int32)

    # Per-class alpha, mirroring the PyTorch __init__ handling.
    if alpha is None:
        alpha_vec = jnp.ones((K,), jnp.float32)
    elif isinstance(alpha, (float, int)):
        assert K == 2, "scalar alpha implies binary classification"
        alpha_vec = jnp.array([alpha, 1.0 - alpha], jnp.float32)
    else:
        alpha_vec = jnp.asarray(alpha, jnp.float32).reshape(K)
    alpha3d = alpha_vec.reshape(1, K, 1)

    logit_bytes = jnp.dtype(logits.dtype).itemsize
    bt_tile = max(1, min(int(bt_tile), NBT))

    # K-aware, generation-aware VMEM budget for the tile size.
    vmem_cap = _vmem_capacity_bytes()
    budget = int(0.55 * vmem_cap)   # leave pipelining / compiler headroom
    # resident bytes per hw lane: logits dbl-buf + sublane-padded int32 target
    # dbl-buf (1 -> 8 sublanes) + f32 acc scratch (also sublane-padded)
    per_hw = bt_tile * (2 * K * logit_bytes + 2 * 8 * 4 + 8 * 4)
    if hw_tile is None:
        hw_goal = min((8 << 20) // max(1, bt_tile * K * logit_bytes),  # ~8 MiB logits block
                      max(1, budget // per_hw))
        hw_tile = max(128, _round_down(hw_goal, 128))
    else:
        hw_tile = max(128, _round_down(int(hw_tile), 128))
    if HW <= 128:
        hw_tile = HW                           # full lane extent (always legal)
    else:
        hw_tile = min(hw_tile, _round_down(HW, 128))

    n_bt = _cdiv(NBT, bt_tile)
    n_hw = _cdiv(HW, hw_tile)

    # Megacore (v7x): if B*T alone gives too few parallel blocks, also split HW
    # on a parallel outer axis. (No-op cost on single-TC v5e/v6e.)
    if n_bt >= 4 or n_hw == 1:
        n_hwo = 1
    else:
        n_hwo = min(n_hw, max(1, _cdiv(8, n_bt)))
    n_hwi = _cdiv(n_hw, n_hwo)

    est_bytes = per_hw * hw_tile + K * 4 + 4096
    vmem_limit = int(min(int(0.9 * vmem_cap), max(est_bytes + (16 << 20), 32 << 20)))

    kernel = functools.partial(
        _focal_kernel, gamma=float(gamma), ignore_index=ignore_index,
        nbt=NBT, hw=HW, bt_tile=bt_tile, hw_tile=hw_tile, n_hw_inner=n_hwi)

    # Clamp the hw block index so every DMA window starts in-bounds; duplicated
    # trailing steps (when n_hwo*n_hwi > n_hw) are zeroed by the in-kernel mask.
    def _hw_blk(o, ii):
        return jnp.minimum(o * n_hwi + ii, n_hw - 1)

    partials = pl.pallas_call(
        kernel,
        out_shape=jax.ShapeDtypeStruct((n_bt * n_hwo, 1, 1), jnp.float32),
        grid_spec=pltpu.PrefetchScalarGridSpec(
            num_scalar_prefetch=0,
            grid=(n_bt, n_hwo, n_hwi),
            in_specs=[
                pl.BlockSpec((bt_tile, K, hw_tile),
                             lambda i, o, ii: (i, 0, _hw_blk(o, ii))),
                pl.BlockSpec((bt_tile, 1, hw_tile),
                             lambda i, o, ii: (i, 0, _hw_blk(o, ii))),
                pl.BlockSpec((1, K, 1), lambda i, o, ii: (0, 0, 0)),
            ],
            out_specs=pl.BlockSpec((1, 1, 1),
                                   lambda i, o, ii: (i * n_hwo + o, 0, 0)),
            scratch_shapes=[pltpu.VMEM((bt_tile, 1, hw_tile), jnp.float32)],
        ),
        compiler_params=pltpu.CompilerParams(
            dimension_semantics=("parallel", "parallel", "arbitrary"),
            vmem_limit_bytes=vmem_limit),
    )(x, t, alpha3d)

    total = jnp.sum(partials)
    if not size_average:
        return total
    if ignore_index is None:
        denom = jnp.float32(NBT * HW)
    else:
        denom = jnp.maximum(
            jnp.sum(target.reshape(-1) != ignore_index).astype(jnp.float32), 1.0)
    return total / denom


def focal_loss_ref(logits, target, alpha=None, *, gamma=2.0,
                   size_average=True, ignore_index=None):
    """Pure-JAX reference mirroring the PyTorch forward (masking == filtering)."""
    B, T, K, H, W = logits.shape
    x = logits.reshape(B * T, K, H * W)
    x = jnp.transpose(x, (0, 2, 1)).reshape(-1, K).astype(jnp.float32)
    t = target.reshape(-1).astype(jnp.int32)
    logp = jax.nn.log_softmax(x, axis=-1)
    tc = jnp.clip(t, 0, K - 1)
    logpt = jnp.take_along_axis(logp, tc[:, None], axis=1)[:, 0]
    pt = jnp.exp(logpt)
    if alpha is not None:
        if isinstance(alpha, (float, int)):
            avec = jnp.array([alpha, 1.0 - alpha], jnp.float32)
        else:
            avec = jnp.asarray(alpha, jnp.float32)
        logpt = logpt * avec[tc]
    loss = -1.0 * (1.0 - pt) ** gamma * logpt
    if ignore_index is not None:
        mask = (t != ignore_index).astype(jnp.float32)
        loss = loss * mask
        denom = jnp.maximum(mask.sum(), 1.0)
    else:
        denom = jnp.float32(loss.shape[0])
    return loss.sum() / denom if size_average else loss.sum()


if __name__ == "__main__":
    key = jax.random.PRNGKey(0)
    B, T, K, H, W = 2, 2, 8, 16, 16
    k1, k2, k3 = jax.random.split(key, 3)
    logits = jax.random.normal(k1, (B, T, K, H, W), dtype=jnp.float32)
    target = jax.random.randint(k2, (B, T, H, W), 0, K, dtype=jnp.int32)
    alpha = jnp.linspace(0.1, 0.8, K, dtype=jnp.float32)

    # 1) Default auto-tiling: gamma=2, per-class alpha, size_average=True.
    out = jax.block_until_ready(
        focal_loss_pallas(logits, target, alpha, gamma=2.0, size_average=True))
    ref = focal_loss_ref(logits, target, alpha, gamma=2.0, size_average=True)
    assert jnp.allclose(out, ref, rtol=1e-4, atol=1e-6), (out, ref)

    # 2) Forced multi-tile grid (bt + parallel hw split) + ignore_index masking.
    out2 = jax.block_until_ready(
        focal_loss_pallas(logits, target, alpha, gamma=2.0, size_average=True,
                          ignore_index=0, bt_tile=2, hw_tile=128))
    ref2 = focal_loss_ref(logits, target, alpha, gamma=2.0, size_average=True,
                          ignore_index=0)
    assert jnp.allclose(out2, ref2, rtol=1e-4, atol=1e-6), (out2, ref2)

    # 3) Non-tile-divisible H*W (130): exercises the in-kernel bounds mask
    #    (no XLA-side pad copy of the logits).
    B3, T3, K3, H3, W3 = 1, 3, 8, 10, 13
    k4, k5 = jax.random.split(k3)
    logits3 = jax.random.normal(k4, (B3, T3, K3, H3, W3), dtype=jnp.float32)
    target3 = jax.random.randint(k5, (B3, T3, H3, W3), 0, K3, dtype=jnp.int32)
    alpha3 = jnp.linspace(0.2, 0.9, K3, dtype=jnp.float32)
    out3 = jax.block_until_ready(
        focal_loss_pallas(logits3, target3, alpha3, gamma=2.0))
    ref3 = focal_loss_ref(logits3, target3, alpha3, gamma=2.0)
    assert jnp.allclose(out3, ref3, rtol=1e-4, atol=1e-6), (out3, ref3)

    # 4) bf16 logits accepted natively (halved HBM traffic); math still f32.
    logits_bf16 = logits3.astype(jnp.bfloat16)
    out4 = jax.block_until_ready(
        focal_loss_pallas(logits_bf16, target3, alpha3, gamma=2.0))
    ref4 = focal_loss_ref(logits_bf16.astype(jnp.float32), target3, alpha3, gamma=2.0)
    assert jnp.allclose(out4, ref4, rtol=1e-3, atol=1e-5), (out4, ref4)

    print("KERNEL_OK")
</pallas_src>

<mosaic_0001>
module attributes {stable_mosaic.version = 11 : i64} {
  func.func @_focal_kernel(%arg0: i32, %arg1: i32, %arg2: i32, %arg3: memref<4x8x256xf32, #tpu.memory_space<vmem>>, %arg4: memref<4x1x256xi32, #tpu.memory_space<vmem>>, %arg5: memref<1x8x1xf32, #tpu.memory_space<vmem>>, %arg6: memref<1x1x1xf32, #tpu.memory_space<vmem>>, %arg7: memref<4x1x256xf32, #tpu.memory_space<vmem>>) attributes {dimension_semantics = [#tpu.dimension_semantics<parallel>, #tpu.dimension_semantics<parallel>, #tpu.dimension_semantics<arbitrary>], iteration_bounds = array<i64: 1, 1, 1>, scalar_prefetch = 0 : i64, scratch_operands = 1 : i64, tpu.core_type = #tpu.core_type<tc>, window_params = [{transform_indices = @transform_0, window_bounds = array<i64: 4, 8, 256>}, {transform_indices = @transform_1, window_bounds = array<i64: 4, 1, 256>}, {pipeline_mode = #tpu.pipeline_mode<synchronous>, transform_indices = @transform_2, window_bounds = array<i64: 1, 8, 1>}, {transform_indices = @transform_3, window_bounds = array<i64: 1, 1, 1>}]} {
    %c0_i32 = arith.constant 0 : i32
    %0 = arith.cmpi eq, %arg2, %c0_i32 : i32
    %1 = arith.extui %0 : i1 to i32
    %c0_i32_0 = arith.constant 0 : i32
    %2 = arith.cmpi ne, %1, %c0_i32_0 : i32
    scf.if %2 {
      %cst_29 = arith.constant 0.000000e+00 : f32
      %68 = vector.broadcast %cst_29 : f32 to vector<4x1x256xf32>
      %c0_30 = arith.constant 0 : index
      %c0_31 = arith.constant 0 : index
      %c0_32 = arith.constant 0 : index
      %69 = vector.load %arg7[%c0_30, %c0_31, %c0_32] : memref<4x1x256xf32, #tpu.memory_space<vmem>>, vector<4x1x256xf32>
      tpu.vector_store %arg7[%c0_30, %c0_31, %c0_32], %68 {strides = array<i32>} : memref<4x1x256xf32, #tpu.memory_space<vmem>>, vector<4x1x256xf32>,
    } else {
    }
    %c0 = arith.constant 0 : index
    %c0_1 = arith.constant 0 : index
    %c0_2 = arith.constant 0 : index
    %3 = vector.load %arg3[%c0, %c0_1, %c0_2] : memref<4x8x256xf32, #tpu.memory_space<vmem>>, vector<4x8x256xf32>
    %c0_3 = arith.constant 0 : index
    %c0_4 = arith.constant 0 : index
    %c0_5 = arith.constant 0 : index
    %4 = vector.load %arg4[%c0_3, %c0_4, %c0_5] : memref<4x1x256xi32, #tpu.memory_space<vmem>>, vector<4x1x256xi32>
    %c0_6 = arith.constant 0 : index
    %c0_7 = arith.constant 0 : index
    %c0_8 = arith.constant 0 : index
    %5 = vector.load %arg5[%c0_6, %c0_7, %c0_8] : memref<1x8x1xf32, #tpu.memory_space<vmem>>, vector<1x8x1xf32>
    %cst = arith.constant dense<0xFF800000> : vector<4x256xf32>
    %6 = vector.multi_reduction <maximumf>, %3, %cst [1] : vector<4x8x256xf32> to vector<4x256xf32>
    %7 = vector.shape_cast %6 : vector<4x256xf32> to vector<4x1x256xf32>
    %8 = vector.broadcast %7 : vector<4x1x256xf32> to vector<4x8x256xf32>
    %9 = arith.subf %3, %8 : vector<4x8x256xf32>
    %10 = math.exp %9 : vector<4x8x256xf32>
    %cst_9 = arith.constant dense<0.000000e+00> : vector<4x256xf32>
    %11 = vector.multi_reduction <add>, %10, %cst_9 [1] : vector<4x8x256xf32> to vector<4x256xf32>
    %12 = vector.shape_cast %11 : vector<4x256xf32> to vector<4x1x256xf32>
    %13 = math.log %12 : vector<4x1x256xf32>
    %14 = tpu.iota {dimensions = array<i32: 1>} : vector<1x8x1xi32>
    %15 = vector.broadcast %14 : vector<1x8x1xi32> to vector<4x8x256xi32>
    %16 = vector.broadcast %4 : vector<4x1x256xi32> to vector<4x8x256xi32>
    %17 = arith.cmpi eq, %15, %16 : vector<4x8x256xi32>
    %cst_10 = arith.constant 0.000000e+00 : f32
    %18 = vector.broadcast %cst_10 : f32 to vector<4x8x256xf32>
    %19 = arith.select %17, %9, %18 : vector<4x8x256xi1>, vector<4x8x256xf32>
    %cst_11 = arith.constant dense<0.000000e+00> : vector<4x256xf32>
    %20 = vector.multi_reduction <add>, %19, %cst_11 [1] : vector<4x8x256xf32> to vector<4x256xf32>
    %21 = vector.shape_cast %20 : vector<4x256xf32> to vector<4x1x256xf32>
    %cst_12 = arith.constant 0.000000e+00 : f32
    %22 = vector.shape_cast %5 : vector<1x8x1xf32> to vector<1x8x1xf32>
    %23 = vector.broadcast %22 : vector<1x8x1xf32> to vector<4x8x256xf32>
    %24 = vector.broadcast %cst_12 : f32 to vector<4x8x256xf32>
    %25 = arith.select %17, %23, %24 : vector<4x8x256xi1>, vector<4x8x256xf32>
    %cst_13 = arith.constant dense<0.000000e+00> : vector<4x256xf32>
    %26 = vector.multi_reduction <add>, %25, %cst_13 [1] : vector<4x8x256xf32> to vector<4x256xf32>
    %27 = vector.shape_cast %26 : vector<4x256xf32> to vector<4x1x256xf32>
    %28 = arith.subf %21, %13 : vector<4x1x256xf32>
    %29 = math.exp %28 : vector<4x1x256xf32>
    %cst_14 = arith.constant 1.000000e+00 : f32
    %30 = vector.broadcast %cst_14 : f32 to vector<4x1x256xf32>
    %31 = arith.subf %30, %29 : vector<4x1x256xf32>
    %cst_15 = arith.constant 0.000000e+00 : f32
    %32 = vector.broadcast %cst_15 : f32 to vector<4x1x256xf32>
    %33 = arith.maximumf %31, %32 : vector<4x1x256xf32>
    %34 = arith.mulf %33, %33 : vector<4x1x256xf32>
    %35 = arith.mulf %34, %27 : vector<4x1x256xf32>
    %cst_16 = arith.constant 0.000000e+00 : f32
    %36 = vector.broadcast %cst_16 : f32 to vector<4x1x256xf32>
    %37 = arith.subf %36, %35 : vector<4x1x256xf32>
    %38 = arith.mulf %37, %28 : vector<4x1x256xf32>
    %c1_i32 = arith.constant 1 : i32
    %39 = arith.muli %arg1, %c1_i32 : i32
    %40 = arith.addi %39, %arg2 : i32
    %c256_i32 = arith.constant 256 : i32
    %41 = arith.muli %40, %c256_i32 : i32
    %42 = tpu.iota {dimensions = array<i32: 2>} : vector<4x1x256xi32>
    %43 = tpu.iota {dimensions = array<i32: 0>} : vector<4x1x256xi32>
    %44 = vector.broadcast %41 : i32 to vector<4x1x256xi32>
    %45 = arith.addi %44, %42 : vector<4x1x256xi32>
    %c256_i32_17 = arith.constant 256 : i32
    %46 = vector.broadcast %c256_i32_17 : i32 to vector<4x1x256xi32>
    %47 = arith.cmpi slt, %45, %46 : vector<4x1x256xi32>
    %c4_i32 = arith.constant 4 : i32
    %48 = arith.muli %arg0, %c4_i32 : i32
    %49 = vector.broadcast %48 : i32 to vector<4x1x256xi32>
    %50 = arith.addi %49, %43 : vector<4x1x256xi32>
    %c4_i32_18 = arith.constant 4 : i32
    %51 = vector.broadcast %c4_i32_18 : i32 to vector<4x1x256xi32>
    %52 = arith.cmpi slt, %50, %51 : vector<4x1x256xi32>
    %53 = arith.andi %47, %52 : vector<4x1x256xi1>
    %c0_i32_19 = arith.constant 0 : i32
    %54 = vector.broadcast %c0_i32_19 : i32 to vector<4x1x256xi32>
    %55 = arith.cmpi sge, %4, %54 : vector<4x1x256xi32>
    %56 = arith.andi %53, %55 : vector<4x1x256xi1>
    %c8_i32 = arith.constant 8 : i32
    %57 = vector.broadcast %c8_i32 : i32 to vector<4x1x256xi32>
    %58 = arith.cmpi slt, %4, %57 : vector<4x1x256xi32>
    %59 = arith.andi %56, %58 : vector<4x1x256xi1>
    %c0_20 = arith.constant 0 : index
    %c0_21 = arith.constant 0 : index
    %c0_22 = arith.constant 0 : index
    %60 = vector.load %arg7[%c0_20, %c0_21, %c0_22] : memref<4x1x256xf32, #tpu.memory_space<vmem>>, vector<4x1x256xf32>
    %cst_23 = arith.constant 0.000000e+00 : f32
    %61 = vector.broadcast %cst_23 : f32 to vector<4x1x256xf32>
    %62 = arith.select %59, %38, %61 : vector<4x1x256xi1>, vector<4x1x256xf32>
    %63 = arith.addf %60, %62 : vector<4x1x256xf32>
    %c0_24 = arith.constant 0 : index
    %c0_25 = arith.constant 0 : index
    %c0_26 = arith.constant 0 : index
    %64 = vector.load %arg7[%c0_24, %c0_25, %c0_26] : memref<4x1x256xf32, #tpu.memory_space<vmem>>, vector<4x1x256xf32>
    tpu.vector_store %arg7[%c0_24, %c0_25, %c0_26], %63 {strides = array<i32>} : memref<4x1x256xf32, #tpu.memory_space<vmem>>, vector<4x1x256xf32>,
    %c0_i32_27 = arith.constant 0 : i32
    %65 = arith.cmpi eq, %arg2, %c0_i32_27 : i32
    %66 = arith.extui %65 : i1 to i32
    %c0_i32_28 = arith.constant 0 : i32
    %67 = arith.cmpi ne, %66, %c0_i32_28 : i32
    scf.if %67 {
      %c0_29 = arith.constant 0 : index
      %c0_30 = arith.constant 0 : index
      %c0_31 = arith.constant 0 : index
      %68 = vector.load %arg7[%c0_29, %c0_30, %c0_31] : memref<4x1x256xf32, #tpu.memory_space<vmem>>, vector<4x1x256xf32>
      %69 = vector.shape_cast %68 : vector<4x1x256xf32> to vector<1x4x1x256xf32>
      %cst_32 = arith.constant dense<0.000000e+00> : vector<1xf32>
      %70 = vector.multi_reduction <add>, %69, %cst_32 [1, 2, 3] : vector<1x4x1x256xf32> to vector<1xf32>
      %71 = vector.shape_cast %70 : vector<1xf32> to vector<1x1x1x1xf32>
      %72 = vector.extract %71[0, 0, 0, 0] : f32 from vector<1x1x1x1xf32>
      %73 = vector.broadcast %72 : f32 to vector<1x1x1xf32>
      %c0_33 = arith.constant 0 : index
      %c0_34 = arith.constant 0 : index
      %c0_35 = arith.constant 0 : index
      %74 = vector.load %arg6[%c0_33, %c0_34, %c0_35] : memref<1x1x1xf32, #tpu.memory_space<vmem>>, vector<1x1x1xf32>
      tpu.vector_store %arg6[%c0_33, %c0_34, %c0_35], %73 {strides = array<i32>} : memref<1x1x1xf32, #tpu.memory_space<vmem>>, vector<1x1x1xf32>,
    } else {
    }
    return
  }
  func.func @transform_0(%arg0: i32, %arg1: i32, %arg2: i32) -> (i32, i32, i32) {
    %c1_i32 = arith.constant 1 : i32
    %0 = arith.muli %arg1, %c1_i32 : i32
    %1 = arith.addi %0, %arg2 : i32
    %c0_i32 = arith.constant 0 : i32
    %2 = arith.minsi %1, %c0_i32 : i32
    %c0_i32_0 = arith.constant 0 : i32
    %c0_i32_1 = arith.constant 0 : i32
    return %arg0, %c0_i32_0, %2 : i32, i32, i32
  }
  func.func @transform_1(%arg0: i32, %arg1: i32, %arg2: i32) -> (i32, i32, i32) {
    %c1_i32 = arith.constant 1 : i32
    %0 = arith.muli %arg1, %c1_i32 : i32
    %1 = arith.addi %0, %arg2 : i32
    %c0_i32 = arith.constant 0 : i32
    %2 = arith.minsi %1, %c0_i32 : i32
    %c0_i32_0 = arith.constant 0 : i32
    %c0_i32_1 = arith.constant 0 : i32
    return %arg0, %c0_i32_0, %2 : i32, i32, i32
  }
  func.func @transform_2(%arg0: i32, %arg1: i32, %arg2: i32) -> (i32, i32, i32) {
    %c0_i32 = arith.constant 0 : i32
    %c0_i32_0 = arith.constant 0 : i32
    %c0_i32_1 = arith.constant 0 : i32
    %c0_i32_2 = arith.constant 0 : i32
    return %c0_i32, %c0_i32_0, %c0_i32_1 : i32, i32, i32
  }
  func.func @transform_3(%arg0: i32, %arg1: i32, %arg2: i32) -> (i32, i32, i32) {
    %c1_i32 = arith.constant 1 : i32
    %0 = arith.muli %arg0, %c1_i32 : i32
    %1 = arith.addi %0, %arg1 : i32
    %c0_i32 = arith.constant 0 : i32
    %c0_i32_0 = arith.constant 0 : i32
    %c0_i32_1 = arith.constant 0 : i32
    return %1, %c0_i32, %c0_i32_0 : i32, i32, i32
  }
}

</mosaic_0001>

<bundles_post_ra>
// kernel: tpu_custom_call.1
= control target key start
LH: loop header
LB: loop body
LE: loop exit
PB: predicated region body
PF: predicated region fallthrough
CT: control target
= control target key end

     0   :  { %8 = vsyncpa [#allocation4], 0  ;;  %s1415_s0 = inlined_call_operand.hbm [shape: f32[4,8,256], index: 0, kind: input, shape index: {}]   ;;  %s1416_s1 = inlined_call_operand.vmem [shape: s32[4,1,256], index: 1, kind: input, shape index: {}]   ;;  %s1417_s2 = inlined_call_operand.vmem [shape: f32[1,8,1], index: 2, kind: input, shape index: {}]   ;;  %s1418_s3 = inlined_call_operand.hbm [shape: f32[1,1,1], index: 3, kind: output, shape index: {}]  }
   0x1   :  { %9 = vsyncpa [#allocation5], 0  ;;  %s904_s12 = smov [#allocation3]   ;;  %s856_s16 = scalar_lea.hbm %s1415_s0, 1024 }
   0x2   :  { %s21_s13 = sshll.u32 %s904_s12, 4  ;;  %p857_p0 = scmp.ne.s32.totalorder %s1415_s0, %s856_s16  ;;  %s22_s13 = int_to_ptr.vmem [resolvable:$true] %s21_s13 }
   0x3   :  { %p860_p1 = scmp.lt.u32.totalorder %s856_s16, %s1415_s0 }
   0x5   :  { %p862_p2 = pnand %p860_p1, %p857_p0 }
   0x7   :  { %865 = shalt.err (!%p862_p2)
}
   0x8   :  { %s866_s21 = scalar_lea.vmem %s22_s13, 1024  ;;  %p871_p4 = scmp.lt.s32.totalorder %s22_s13, %s22_s13 }
   0x9   :  { %p867_p3 = scmp.ne.s32.totalorder %s22_s13, %s866_s21  ;;  %p872_p5 = scmp.lt.s32.totalorder %s866_s21, %s866_s21 }
   0xb   :  { %p873_p6 = por %p872_p5, %p871_p4 }
   0xd   :  { %p874_p7 = pnand %p873_p6, %p867_p3 }
   0xf   :  { %877 = shalt.err (!%p874_p7)
}
  0x10   :  { %s905_s22 = smov 256   ;;  %s906_s23 = smov 16  }
  0x11   :  { %27 = dma.hbm_to_vmem [thread:$0]  %s1415_s0, 1024, %s22_s13, [#allocation4], %s905_s22, %s905_s22, %s906_s23  }
  0x12   :  { %900 = dma.done.wait [#allocation4], 1024  }
  0x13   :  { %901 = vsyncadd [#allocation4], 4294966272  ;;  %v73_v0 = vlaneseq  ;;  %v907_v1 = vmov 0   ;;  %v1433_v2 = vmov 0  ;;  %v908_v3 = vmov 0.0   ;;  %v93_v4 = vld [vmem:[%s1417_s2] sm:$0xff] }
  0x14   :  { %807 = vset.pattern.permute.xlu0 %v907_v1  ;;  %v81_v5 = vld [vmem:[#allocation3] sm:$0xff]  ;;  %v82_v6 = vld [vmem:[#allocation3 + $0x8] sm:$0xff]  ;;  %v83_v7 = vld [vmem:[#allocation3 + $0x10] sm:$0xff] }
  0x15   :  { %vm945_vm0 = vcmp.lt.s32.totalorder %v73_v0, 256  ;;  %330 = vperm.xlu0 %807, %v93_v4   ;;  %v84_v8 = vld [vmem:[#allocation3 + $0x18] sm:$0xff]  ;;  %v94_v9 = vrot.slane %v81_v5, 4  ;;  %v85_v10 = vld [vmem:[#allocation3 + $0x20] sm:$0xff]  ;;  %v100_v11 = vrot.slane %v82_v6, 4  ;;  %v86_v12 = vld [vmem:[#allocation3 + $0x28] sm:$0xff] }
  0x16   :  { %v1434_v2 = vsel %vm945_vm0, 4294967295, %v1433_v2  ;;  %77 = vst.msk [vmem:[#allocation2] sm:$0x3] %vm945_vm0, %v908_v3  ;;  %78 = vst.msk [vmem:[#allocation2 + $0x2] sm:$0x3] %vm945_vm0, %v908_v3  ;;  %v106_v13 = vrot.slane %v83_v7, 4 }
  0x17   :  { %1435 = vst [vmem:[#allocation9_spill] sm:$0xff] %v1434_v2  ;;  %79 = vst.msk [vmem:[#allocation2 + $0x4] sm:$0x3] %vm945_vm0, %v908_v3  ;;  %v87_v14 = vld [vmem:[#allocation3 + $0x30] sm:$0xff]  ;;  %v112_v15 = vrot.slane %v84_v8, 4  ;;  %v88_v16 = vld [vmem:[#allocation3 + $0x38] sm:$0xff]  ;;  %v95_v17 = vmax.f32 %v81_v5, %v94_v9  ;;  %v101_v19 = vmax.f32 %v82_v6, %v100_v11 }
  0x18   :  { %80 = vst.msk [vmem:[#allocation2 + $0x6] sm:$0x3] %vm945_vm0, %v908_v3  ;;  %v118_v18 = vrot.slane %v85_v10, 4  ;;  %v124_v20 = vrot.slane %v86_v12, 4  ;;  %v107_v21 = vmax.f32 %v83_v7, %v106_v13  ;;  %v130_v22 = vrot.slane %v87_v14, 4 }
  0x19   :  { %v113_v23 = vmax.f32 %v84_v8, %v112_v15  ;;  %v136_v24 = vrot.slane %v88_v16, 4  ;;  %v96_v25 = vrot.slane %v95_v17, 2  ;;  %v102_v27 = vrot.slane %v101_v19, 2 }
  0x1a   :  { %v119_v26 = vmax.f32 %v85_v10, %v118_v18  ;;  %v125_v28 = vmax.f32 %v86_v12, %v124_v20  ;;  %v108_v29 = vrot.slane %v107_v21, 2  ;;  %v131_v30 = vmax.f32 %v87_v14, %v130_v22 }
  0x1b   :  { %v114_v31 = vrot.slane %v113_v23, 2  ;;  %v137_v32 = vmax.f32 %v88_v16, %v136_v24  ;;  %v97_v33 = vmax.f32 %v95_v17, %v96_v25  ;;  %v103_v35 = vmax.f32 %v101_v19, %v102_v27 }
  0x1c   :  { %v120_v34 = vrot.slane %v119_v26, 2  ;;  %v126_v36 = vrot.slane %v125_v28, 2  ;;  %v109_v37 = vmax.f32 %v107_v21, %v108_v29  ;;  %v132_v38 = vrot.slane %v131_v30, 2 }
  0x1d   :  { %v115_v39 = vmax.f32 %v113_v23, %v114_v31  ;;  %v138_v40 = vrot.slane %v137_v32, 2  ;;  %v98_v41 = vrot.slane %v97_v33, 1  ;;  %v104_v43 = vrot.slane %v103_v35, 1 }
  0x1e   :  { %v121_v42 = vmax.f32 %v119_v26, %v120_v34  ;;  %v127_v44 = vmax.f32 %v125_v28, %v126_v36  ;;  %v110_v45 = vrot.slane %v109_v37, 1  ;;  %v133_v46 = vmax.f32 %v131_v30, %v132_v38  ;;  %v1006_v36 = vld [vmem:[%s1416_s1 + $0x4] sm:$0x3] }
  0x1f   :  { %v116_v47 = vrot.slane %v115_v39, 1  ;;  %v139_v48 = vmax.f32 %v137_v32, %v138_v40  ;;  %v99_v49 = vmax.f32 %v97_v33, %v98_v41  ;;  %v105_v51 = vmax.f32 %v103_v35, %v104_v43  ;;  %v1001_v33 = vld [vmem:[%s1416_s1 + $0x2] sm:$0x3] }
  0x20   :  { %v122_v50 = vrot.slane %v121_v42, 1  ;;  %v128_v52 = vrot.slane %v127_v44, 1  ;;  %v111_v53 = vmax.f32 %v109_v37, %v110_v45  ;;  %v134_v54 = vrot.slane %v133_v46, 1 }
  0x21   :  { %v117_v55 = vmax.f32 %v115_v39, %v116_v47  ;;  %v140_v56 = vrot.slane %v139_v48, 1  ;;  %v960_v58 = vsub.f32 %v81_v5, %v99_v49  ;;  %v962_v60 = vsub.f32 %v82_v6, %v105_v51  ;;  %v1011_v39 = vld [vmem:[%s1416_s1 + $0x6] sm:$0x3] }
  0x22   :  { %v123_v57 = vmax.f32 %v121_v42, %v122_v50  ;;  %v129_v59 = vmax.f32 %v127_v44, %v128_v52  ;;  %v135_v61 = vmax.f32 %v133_v46, %v134_v54  ;;  %v964_v62 = vsub.f32 %v83_v7, %v111_v53 }
  0x23   :  { %v141_v63 = vmax.f32 %v139_v48, %v140_v56  ;;  %v966_v3 = vsub.f32 %v84_v8, %v117_v55  ;;  %v150_v9 = vmul.f32 1.442695, %v960_v58  ;;  %v152_v13 = vmul.f32 1.442695, %v962_v60 }
  0x24   :  { %v968_v4 = vsub.f32 %v85_v10, %v123_v57  ;;  %v971_v11 = vsub.f32 %v86_v12, %v129_v59  ;;  %v974_v15 = vsub.f32 %v87_v14, %v135_v61  ;;  %v154_v5 = vmul.f32 1.442695, %v964_v62 }
  0x25   :  { %v977_v6 = vsub.f32 %v88_v16, %v141_v63  ;;  %v156_v7 = vmul.f32 1.442695, %v966_v3  ;;  %808 = vpow2.f32 %v150_v9  ;;  %v985_v19 = vshrl.u32 %v73_v0, 7  ;;  %v996_v0 = vld [vmem:[%s1416_s1] sm:$0x3]  ;;  %s910_s1 = smov [#allocation6]  }
  0x26   :  { %v158_v8 = vmul.f32 1.442695, %v968_v4  ;;  %810 = vpow2.f32 %v152_v13  ;;  %v160_v10 = vmul.f32 1.442695, %v971_v11  ;;  %v162_v12 = vmul.f32 1.442695, %v974_v15 }
  0x27   :  { %812 = vpow2.f32 %v154_v5  ;;  %v164_v17 = vmul.f32 1.442695, %v977_v6  ;;  %v988_v27 = vsub.s32 0, %v985_v19  ;;  %v991_v28 = vsub.s32 1, %v985_v19  ;;  %s784_s7 = sshll.u32 %s910_s1, 4  ;;  %s785_s7 = int_to_ptr.vmem [resolvable:$true] %s784_s7 }
  0x28   :  { %814 = vpow2.f32 %v156_v7  ;;  %vm488_vm9 = vcmp.ge.s32.totalorder %v996_v0, 0  ;;  %vm489_vm10 = vcmp.ge.s32.totalorder %v1001_v33, 0  ;;  %vm490_vm11 = vcmp.ge.s32.totalorder %v1006_v36, 0  ;;  %s878_s9 = scalar_lea.vmem %s785_s7, 16  ;;  %s882_s10 = scalar_lea.vmem %s785_s7, 32 }
  0x29   :  { %816 = vpow2.f32 %v158_v8  ;;  %1436 = vst [vmem:[#allocation10_spill] sm:$0xff] %v988_v27  ;;  %1437 = vst [vmem:[#allocation11_spill] sm:$0xff] %v991_v28  ;;  %v235_v42 = vrot.slane %v996_v0, %v988_v27  ;;  %v239_v43 = vrot.slane %v996_v0, %v991_v28  ;;  %v243_v46 = vrot.slane %v1001_v33, %v988_v27  ;;  %p879_p8 = scmp.ne.s32.totalorder %s785_s7, %s878_s9  ;;  %p883_p9 = scmp.lt.s32.totalorder %s785_s7, %s785_s7 }
  0x2a   :  { %818 = vpow2.f32 %v160_v10  ;;  %v247_v47 = vrot.slane %v1001_v33, %v991_v28  ;;  %v251_v50 = vrot.slane %v1006_v36, %v988_v27  ;;  %v255_v51 = vrot.slane %v1006_v36, %v991_v28  ;;  %p884_p10 = scmp.lt.s32.totalorder %s882_s10, %s878_s9 }
  0x2b   :  { %820 = vpow2.f32 %v162_v12  ;;  %v259_v54 = vrot.slane %v1011_v39, %v988_v27  ;;  %v263_v55 = vrot.slane %v1011_v39, %v991_v28  ;;  %vm1030_vm1 = vcmp.eq.s32.totalorder %v985_v19, %v235_v42 }
  0x2c   :  { %822 = vpow2.f32 %v164_v17  ;;  %vm1035_vm2 = vcmp.eq.s32.totalorder %v985_v19, %v239_v43  ;;  %vm1040_vm3 = vcmp.eq.s32.totalorder %v985_v19, %v243_v46  ;;  %vm1045_vm4 = vcmp.eq.s32.totalorder %v985_v19, %v247_v47  ;;  %p885_p11 = por %p884_p10, %p883_p9 }
  0x2d   :  { %vm1050_vm5 = vcmp.eq.s32.totalorder %v985_v19, %v251_v50  ;;  %vm1055_vm6 = vcmp.eq.s32.totalorder %v985_v19, %v255_v51  ;;  %vm1060_vm7 = vcmp.eq.s32.totalorder %v985_v19, %v259_v54  ;;  %vm1068_vm8 = vcmp.eq.s32.totalorder %v985_v19, %v263_v55 }
  0x2e   :  { %vm491_vm12 = vcmp.ge.s32.totalorder %v1011_v39, 0  ;;  %vm544_vm13 = vcmp.lt.s32.totalorder %v996_v0, 8  ;;  %vm545_vm14 = vcmp.lt.s32.totalorder %v1001_v33, 8  ;;  %vm546_vm15 = vcmp.lt.s32.totalorder %v1006_v36, 8  ;;  %p886_p12 = pnand %p885_p11, %p879_p8 }
  0x2f   :  { %v809_v14 = vpop.eup %808 }
  0x30   :  { %v811_v16 = vpop.eup %810  ;;  %v166_v21 = vrot.slane %v809_v14, 4 }
  0x31   :  { %v813_v18 = vpop.eup %812  ;;  %v172_v23 = vrot.slane %v811_v16, 4 }
  0x32   :  { %v815_v20 = vpop.eup %814  ;;  %v178_v25 = vrot.slane %v813_v18, 4  ;;  %v167_v31 = vadd.f32 %v809_v14, %v166_v21 }
  0x33   :  { %v817_v22 = vpop.eup %816  ;;  %v184_v29 = vrot.slane %v815_v20, 4  ;;  %v173_v34 = vadd.f32 %v811_v16, %v172_v23  ;;  %v273_v23 = vsel %vm1035_vm2, %v962_v60, 0.0  ;;  %v277_v60 = vsel %vm1055_vm6, %v971_v11, 0.0  ;;  %v600_v16 = vld [vmem:[#allocation2] sm:$0x3] }
  0x34   :  { %v819_v24 = vpop.eup %818  ;;  %v190_v32 = vrot.slane %v817_v22, 4  ;;  %v179_v37 = vadd.f32 %v813_v18, %v178_v25  ;;  %v168_v44 = vrot.slane %v167_v31, 2  ;;  %v272_v18 = vsel %vm1030_vm1, %v960_v58, 0.0 }
  0x35   :  { %v821_v26 = vpop.eup %820  ;;  %v196_v35 = vrot.slane %v819_v24, 4  ;;  %v185_v40 = vadd.f32 %v815_v20, %v184_v29  ;;  %v174_v48 = vrot.slane %v173_v34, 2  ;;  %v275_v58 = vsel %vm1045_vm4, %v966_v3, 0.0 }
  0x36   :  { %v823_v30 = vpop.eup %822  ;;  %v202_v38 = vrot.slane %v821_v26, 4  ;;  %v191_v45 = vadd.f32 %v817_v22, %v190_v32  ;;  %v180_v52 = vrot.slane %v179_v37, 2  ;;  %v169_v63 = vadd.f32 %v168_v44, %v167_v31 }
  0x37   :  { %v208_v41 = vrot.slane %v823_v30, 4  ;;  %v197_v49 = vadd.f32 %v819_v24, %v196_v35  ;;  %v186_v56 = vrot.slane %v185_v40, 2  ;;  %v175_v7 = vadd.f32 %v174_v48, %v173_v34 }
  0x38   :  { %v203_v53 = vadd.f32 %v821_v26, %v202_v38  ;;  %v192_v9 = vrot.slane %v191_v45, 2  ;;  %v181_v17 = vadd.f32 %v180_v52, %v179_v37  ;;  %v170_v24 = vrot.slane %v169_v63, 1 }
  0x39   :  { %v209_v57 = vadd.f32 %v823_v30, %v208_v41  ;;  %v198_v8 = vrot.slane %v197_v49, 2  ;;  %v187_v20 = vadd.f32 %v186_v56, %v185_v40  ;;  %v274_v26 = vsel %vm1040_vm3, %v964_v62, 0.0 }
  0x3a   :  { %v204_v14 = vrot.slane %v203_v53, 2  ;;  %v193_v25 = vadd.f32 %v192_v9, %v191_v45  ;;  %v176_v29 = vrot.slane %v175_v7, 1  ;;  %v276_v31 = vsel %vm1050_vm5, %v968_v4, 0.0 }
  0x3b   :  { %v210_v21 = vrot.slane %v209_v57, 2  ;;  %v199_v30 = vadd.f32 %v198_v8, %v197_v49  ;;  %v280_v32 = vrot.slane %v272_v18, 4  ;;  %v182_v34 = vrot.slane %v181_v17, 1 }
  0x3c   :  { %v205_v35 = vadd.f32 %v204_v14, %v203_v53  ;;  %v286_v37 = vrot.slane %v273_v23, 4  ;;  %v188_v38 = vrot.slane %v187_v20, 1  ;;  %v278_v3 = vsel %vm1060_vm7, %v974_v15, 0.0 }
  0x3d   :  { %v211_v62 = vadd.f32 %v210_v21, %v209_v57  ;;  %v292_v40 = vrot.slane %v274_v26, 4  ;;  %v171_v41 = vadd.f32 %v170_v24, %v169_v63  ;;  %v194_v42 = vrot.slane %v193_v25, 1 }
  0x3e   :  { %v279_v4 = vsel %vm1068_vm8, %v977_v6, 0.0  ;;  %v298_v43 = vrot.slane %v275_v58, 4  ;;  %v177_v44 = vadd.f32 %v176_v29, %v175_v7  ;;  %v200_v45 = vrot.slane %v199_v30, 1 }
  0x3f   :  { %v281_v46 = vadd.f32 %v280_v32, %v272_v18  ;;  %v304_v47 = vrot.slane %v276_v31, 4  ;;  %v183_v11 = vadd.f32 %v182_v34, %v181_v17  ;;  %v206_v48 = vrot.slane %v205_v35, 1 }
  0x40   :  { %v287_v49 = vadd.f32 %v286_v37, %v273_v23  ;;  %v310_v50 = vrot.slane %v277_v60, 4  ;;  %v189_v51 = vadd.f32 %v188_v38, %v187_v20  ;;  %v212_v52 = vrot.slane %v211_v62, 1 }
  0x41   :  { %v293_v53 = vadd.f32 %v292_v40, %v274_v26  ;;  %v316_v15 = vrot.slane %v278_v3, 4  ;;  %v195_v54 = vadd.f32 %v194_v42, %v193_v25  ;;  %824 = vlog2.f32 %v171_v41 }
  0x42   :  { %v299_v55 = vadd.f32 %v298_v43, %v275_v58  ;;  %v322_v56 = vrot.slane %v279_v4, 4  ;;  %v201_v57 = vadd.f32 %v200_v45, %v199_v30  ;;  %826 = vlog2.f32 %v177_v44 }
  0x43   :  { %v282_v6 = vrot.slane %v281_v46, 2  ;;  %v305_v63 = vadd.f32 %v304_v47, %v276_v31  ;;  %v207_v9 = vadd.f32 %v206_v48, %v205_v35  ;;  %828 = vlog2.f32 %v183_v11 }
  0x44   :  { %v288_v7 = vrot.slane %v287_v49, 2  ;;  %v311_v8 = vadd.f32 %v310_v50, %v277_v60  ;;  %v213_v17 = vadd.f32 %v212_v52, %v211_v62  ;;  %830 = vlog2.f32 %v189_v51 }
  0x45   :  { %v294_v14 = vrot.slane %v293_v53, 2  ;;  %v317_v18 = vadd.f32 %v316_v15, %v278_v3  ;;  %832 = vlog2.f32 %v195_v54  ;;  %v300_v20 = vrot.slane %v299_v55, 2 }
  0x46   :  { %v323_v21 = vadd.f32 %v322_v56, %v279_v4  ;;  %834 = vlog2.f32 %v201_v57  ;;  %v283_v23 = vadd.f32 %v282_v6, %v281_v46  ;;  %v306_v24 = vrot.slane %v305_v63, 2 }
  0x47   :  { %836 = vlog2.f32 %v207_v9  ;;  %v289_v25 = vadd.f32 %v288_v7, %v287_v49  ;;  %v312_v26 = vrot.slane %v311_v8, 2  ;;  %v295_v58 = vadd.f32 %v294_v14, %v293_v53 }
  0x48   :  { %838 = vlog2.f32 %v213_v17  ;;  %v318_v29 = vrot.slane %v317_v18, 2  ;;  %v301_v30 = vadd.f32 %v300_v20, %v299_v55  ;;  %v324_v31 = vrot.slane %v323_v21, 2 }
  0x49   :  { %v284_v32 = vrot.slane %v283_v23, 1  ;;  %v307_v34 = vadd.f32 %v306_v24, %v305_v63  ;;  %v290_v60 = vrot.slane %v289_v25, 1  ;;  %v313_v37 = vadd.f32 %v312_v26, %v311_v8 }
  0x4a   :  { %v296_v62 = vrot.slane %v295_v58, 1  ;;  %v319_v3 = vadd.f32 %v318_v29, %v317_v18  ;;  %v302_v41 = vrot.slane %v301_v30, 1  ;;  %v325_v42 = vadd.f32 %v324_v31, %v323_v21 }
  0x4b   :  { %v825_v35 = vpop.eup %824  ;;  %v285_v44 = vadd.f32 %v284_v32, %v283_v23  ;;  %v308_v45 = vrot.slane %v307_v34, 1  ;;  %v291_v11 = vadd.f32 %v290_v60, %v289_v25  ;;  %v314_v48 = vrot.slane %v313_v37, 1 }
  0x4c   :  { %v827_v38 = vpop.eup %826  ;;  %v215_v43 = vmul.f32 0.6931472, %v825_v35  ;;  %v297_v51 = vadd.f32 %v296_v62, %v295_v58  ;;  %v320_v52 = vrot.slane %v319_v3, 1  ;;  %v303_v54 = vadd.f32 %v302_v41, %v301_v30 }
  0x4d   :  { %v829_v40 = vpop.eup %828  ;;  %v217_v47 = vmul.f32 0.6931472, %v827_v38  ;;  %v326_v55 = vrot.slane %v325_v42, 1  ;;  %v309_v6 = vadd.f32 %v308_v45, %v307_v34  ;;  %v315_v7 = vadd.f32 %v314_v48, %v313_v37 }
  0x4e   :  { %v831_v4 = vpop.eup %830  ;;  %v219_v50 = vmul.f32 0.6931472, %v829_v40  ;;  %v1093_v63 = vsub.f32 %v285_v44, %v215_v43  ;;  %v321_v14 = vadd.f32 %v320_v52, %v319_v3  ;;  %v909_v38 = vmov 1966171168  }
  0x4f   :  { %v833_v46 = vpop.eup %832  ;;  %v221_v15 = vmul.f32 0.6931472, %v831_v4  ;;  %v1095_v8 = vsub.f32 %v291_v11, %v217_v47  ;;  %v327_v21 = vadd.f32 %v326_v55, %v325_v42  ;;  %v622_v62 = vunpack.c.l.s4 %v909_v38 }
  0x50   :  { %v835_v49 = vpop.eup %834  ;;  %v223_v57 = vmul.f32 0.6931472, %v833_v46  ;;  %v1097_v18 = vsub.f32 %v297_v51, %v219_v50  ;;  %v397_v25 = vmul.f32 1.442695, %v1093_v63  ;;  %v1122_v44 = vsel %vm488_vm9, 1, %v907_v1 }
  0x51   :  { %v837_v53 = vpop.eup %836  ;;  %v225_v9 = vmul.f32 0.6931472, %v835_v49  ;;  %v1099_v23 = vsub.f32 %v303_v54, %v221_v15  ;;  %v399_v58 = vmul.f32 1.442695, %v1095_v8  ;;  %v623_v42 = vunpack.c.0.s8 %v622_v62 }
  0x52   :  { %v839_v56 = vpop.eup %838  ;;  %v227_v17 = vmul.f32 0.6931472, %v837_v53  ;;  %v1101_v24 = vsub.f32 %v309_v6, %v223_v57  ;;  %v401_v30 = vmul.f32 1.442695, %v1097_v18  ;;  %840 = vpow2.f32 %v397_v25 }
  0x53   :  { %v229_v20 = vmul.f32 0.6931472, %v839_v56  ;;  %v1104_v26 = vsub.f32 %v315_v7, %v225_v9  ;;  %v403_v32 = vmul.f32 1.442695, %v1099_v23  ;;  %842 = vpow2.f32 %v399_v58 }
  0x54   :  { %v1107_v29 = vsub.f32 %v321_v14, %v227_v17  ;;  %v405_v34 = vmul.f32 1.442695, %v1101_v24  ;;  %844 = vpow2.f32 %v401_v30  ;;  %v1125_v45 = vsel %vm489_vm10, 1, %v907_v1 }
  0x55   :  { %v1110_v31 = vsub.f32 %v327_v21, %v229_v20  ;;  %v407_v35 = vmul.f32 1.442695, %v1104_v26  ;;  %846 = vpow2.f32 %v403_v32  ;;  %v1128_v11 = vsub.s32 %v623_v42, %v985_v19 }
  0x56   :  { %v409_v60 = vmul.f32 1.442695, %v1107_v29  ;;  %848 = vpow2.f32 %v405_v34  ;;  %v1131_v48 = vsel %vm490_vm11, 1, %v907_v1  ;;  %v1134_v49 = vsel %vm491_vm12, 1, %v907_v1 }
  0x57   :  { %1454 = vst [vmem:[#allocation12_spill] sm:$0xff] %v1110_v31  ;;  %v411_v37 = vmul.f32 1.442695, %v1110_v31  ;;  %850 = vpow2.f32 %v407_v35  ;;  %1455 = vst [vmem:[#allocation13_spill] sm:$0xff] %v1128_v11  ;;  %v499_v51 = vrot.slane %v1122_v44, %v988_v27  ;;  %v503_v52 = vrot.slane %v1122_v44, %v991_v28 }
  0x58   :  { %852 = vpow2.f32 %v409_v60  ;;  %v507_v53 = vrot.slane %v1125_v45, %v988_v27  ;;  %v511_v19 = vrot.slane %v1125_v45, %v991_v28  ;;  %vm547_vm9 = vcmp.lt.s32.totalorder %v1011_v39, 8 }
  0x59   :  { %854 = vpow2.f32 %v411_v37  ;;  %v515_v17 = vrot.slane %v1131_v48, %v988_v27  ;;  %v519_v14 = vrot.slane %v1131_v48, %v991_v28  ;;  %v523_v20 = vrot.slane %v1134_v49, %v988_v27 }
  0x5a   :  { %v548_v25 = vsel %vm544_vm13, 1, %v907_v1  ;;  %v549_v58 = vsel %vm545_vm14, 1, %v907_v1  ;;  %v550_v30 = vsel %vm546_vm15, 1, %v907_v1  ;;  %v1168_v32 = vsel %vm547_vm9, 1, %v907_v1 }
  0x5b   :  { %v555_v33 = vrot.slane %v548_v25, %v988_v27  ;;  %v563_v36 = vrot.slane %v549_v58, %v988_v27  ;;  %v571_v39 = vrot.slane %v550_v30, %v988_v27  ;;  %v575_v1 = vrot.slane %v550_v30, %v991_v28 }
  0x5c   :  { %v841_v3 = vpop.eup %840  ;;  %v579_v42 = vrot.slane %v1168_v32, %v988_v27  ;;  %vm1204_vm10 = vcmp.ne.s32.totalorder %v499_v51, 0  ;;  %vm1258_vm12 = vcmp.ne.s32.totalorder %v519_v14, 0  ;;  %vm1269_vm14 = vcmp.ne.s32.totalorder %v523_v20, 0 }
  0x5d   :  { %v843_v40 = vpop.eup %842  ;;  %v413_v15 = vsub.f32 1.0, %v841_v3  ;;  %vm1208_vm11 = vcmp.ne.s32.totalorder %v555_v33, 0  ;;  %vm1262_vm13 = vcmp.ne.s32.totalorder %v575_v1, 0  ;;  %v1482_v48 = vmov 0 }
  0x5e   :  { %v845_v41 = vpop.eup %844  ;;  %v414_v54 = vsub.f32 1.0, %v843_v40  ;;  %v559_v40 = vrot.slane %v548_v25, %v991_v28  ;;  %vm1273_vm15 = vcmp.ne.s32.totalorder %v579_v42, 0 }
  0x5f   :  { %v847_v4 = vpop.eup %846  ;;  %v415_v55 = vsub.f32 1.0, %v845_v41  ;;  %v421_v34 = vmax.f32 %v413_v15, 0.0  ;;  %v567_v41 = vrot.slane %v549_v58, %v991_v28  ;;  %v1483_v48 = vsel %vm1273_vm15, 4294967295, %v1482_v48 }
  0x60   :  { %v849_v43 = vpop.eup %848  ;;  %v416_v56 = vsub.f32 1.0, %v847_v4  ;;  %v422_v35 = vmax.f32 %v414_v54, 0.0  ;;  %v583_v4 = vrot.slane %v1168_v32, %v991_v28 }
  0x61   :  { %v851_v46 = vpop.eup %850  ;;  %v417_v57 = vsub.f32 1.0, %v849_v43  ;;  %v423_v60 = vmax.f32 %v415_v55, 0.0  ;;  %v1180_v43 = vmul.f32 %v421_v34, %v421_v34 }
  0x62   :  { %v853_v47 = vpop.eup %852  ;;  %v418_v6 = vsub.f32 1.0, %v851_v46  ;;  %v424_v37 = vmax.f32 %v416_v56, 0.0  ;;  %v1182_v44 = vmul.f32 %v422_v35, %v422_v35  ;;  %vm1284_vm0 = vcmp.ne.s32.totalorder %v583_v4, 0 }
  0x63   :  { %v855_v50 = vpop.eup %854  ;;  %v419_v9 = vsub.f32 1.0, %v853_v47  ;;  %v425_v38 = vmax.f32 %v417_v57, 0.0  ;;  %v1184_v46 = vmul.f32 %v423_v60, %v423_v60 }
  0x64   :  { %v420_v7 = vsub.f32 1.0, %v855_v50  ;;  %v426_v0 = vmax.f32 %v418_v6, 0.0  ;;  %v1186_v47 = vmul.f32 %v424_v37, %v424_v37 }
  0x65   :  { %v427_v62 = vmax.f32 %v419_v9, 0.0  ;;  %v1188_v15 = vmul.f32 %v425_v38, %v425_v38  ;;  %v1504_v38 = vld [vmem:[#allocation13_spill] sm:$0xff] }
  0x66   :  { %v428_v3 = vmax.f32 %v420_v7, 0.0  ;;  %v1190_v54 = vmul.f32 %v426_v0, %v426_v0 }
  0x67   :  { %v1192_v55 = vmul.f32 %v427_v62, %v427_v62 }
  0x68   :  { %v1194_v56 = vmul.f32 %v428_v3, %v428_v3 }
  0x94   :  { %v331_v50 = vpop.permute.xlu0 %330 }
  0x95   :  { %v333_v57 = vsel %vm1030_vm1, %v331_v50, 0.0  ;;  %v334_v6 = vsel %vm1035_vm2, %v331_v50, 0.0  ;;  %v335_v9 = vsel %vm1040_vm3, %v331_v50, 0.0  ;;  %v336_v7 = vsel %vm1045_vm4, %v331_v50, 0.0 }
  0x96   :  { %v337_v59 = vsel %vm1050_vm5, %v331_v50, 0.0  ;;  %v338_v61 = vsel %vm1055_vm6, %v331_v50, 0.0  ;;  %v339_v13 = vsel %vm1060_vm7, %v331_v50, 0.0  ;;  %v340_v5 = vsel %vm1068_vm8, %v331_v50, 0.0 }
  0x97   :  { %vm1220_vm1 = vcmp.ne.s32.totalorder %v503_v52, 0  ;;  %vm1224_vm2 = vcmp.ne.s32.totalorder %v559_v40, 0  ;;  %v341_v32 = vrot.slane %v333_v57, 4  ;;  %v347_v10 = vrot.slane %v334_v6, 4 }
  0x98   :  { %v353_v34 = vrot.slane %v335_v9, 4  ;;  %v359_v35 = vrot.slane %v336_v7, 4  ;;  %vm1228_vm3 = vcmp.ne.s32.totalorder %v507_v53, 0  ;;  %vm1232_vm4 = vcmp.ne.s32.totalorder %v563_v36, 0  ;;  %vm1494_vm15 = vmand %vm1220_vm1, %vm1224_vm2 }
  0x99   :  { %v365_v22 = vrot.slane %v337_v59, 4  ;;  %v371_v52 = vrot.slane %v338_v61, 4  ;;  %v377_v60 = vrot.slane %v339_v13, 4  ;;  %v383_v37 = vrot.slane %v340_v5, 4 }
  0x9a   :  { %vm1239_vm5 = vcmp.ne.s32.totalorder %v511_v19, 0  ;;  %vm1243_vm6 = vcmp.ne.s32.totalorder %v567_v41, 0  ;;  %v1470_v53 = vmov 0  ;;  %v342_v0 = vadd.f32 %v341_v32, %v333_v57 }
  0x9b   :  { %v1471_v53 = vsel %vm1243_vm6, 4294967295, %v1470_v53  ;;  %v348_v62 = vadd.f32 %v347_v10, %v334_v6  ;;  %v354_v3 = vadd.f32 %v353_v34, %v335_v9  ;;  %v360_v33 = vadd.f32 %v359_v35, %v336_v7  ;;  %vm1493_vm6 = vmand %vm1204_vm10, %vm1208_vm11 }
  0x9c   :  { %vm1247_vm7 = vcmp.ne.s32.totalorder %v515_v17, 0  ;;  %vm1251_vm8 = vcmp.ne.s32.totalorder %v571_v39, 0  ;;  %v366_v45 = vadd.f32 %v365_v22, %v337_v59  ;;  %v372_v19 = vadd.f32 %v371_v52, %v338_v61 }
  0x9d   :  { %v378_v50 = vadd.f32 %v377_v60, %v339_v13  ;;  %v384_v21 = vadd.f32 %v383_v37, %v340_v5  ;;  %v1478_v17 = vmov 0  ;;  %v343_v57 = vrot.slane %v342_v0, 2  ;;  %vm1498_vm10 = vmand %vm1247_vm7, %vm1251_vm8 }
  0x9e   :  { %v1479_v17 = vsel %vm1262_vm13, 4294967295, %v1478_v17  ;;  %v349_v39 = vrot.slane %v348_v62, 2  ;;  %v355_v6 = vrot.slane %v354_v3, 2  ;;  %v361_v9 = vrot.slane %v360_v33, 2 }
  0x9f   :  { %v1480_v7 = vmov 0  ;;  %v367_v14 = vrot.slane %v366_v45, 2  ;;  %v373_v1 = vrot.slane %v372_v19, 2  ;;  %v379_v59 = vrot.slane %v378_v50, 2 }
  0xa0   :  { %v1481_v7 = vsel %vm1269_vm14, 4294967295, %v1480_v7  ;;  %v385_v61 = vrot.slane %v384_v21, 2  ;;  %v1484_v13 = vrot.slane %v1134_v49, %v991_v28  ;;  %v1485_v5 = vmov 0  ;;  %vm1490_vm14 = vmmov %vm1284_vm0 }
  0xa1   :  { %v344_v32 = vadd.f32 %v343_v57, %v342_v0  ;;  %v350_v42 = vadd.f32 %v349_v39, %v348_v62  ;;  %v356_v10 = vadd.f32 %v355_v6, %v354_v3  ;;  %v362_v34 = vadd.f32 %v361_v9, %v360_v33 }
  0xa2   :  { %vm1280_vm9 = vcmp.ne.s32.totalorder %v1484_v13, 0  ;;  %v368_v35 = vadd.f32 %v367_v14, %v366_v45  ;;  %v374_v22 = vadd.f32 %v373_v1, %v372_v19  ;;  %v380_v52 = vadd.f32 %v379_v59, %v378_v50 }
  0xa3   :  { %v1486_v5 = vsel %vm1280_vm9, 4294967295, %v1485_v5  ;;  %v386_v60 = vadd.f32 %v385_v61, %v384_v21  ;;  %v345_v37 = vrot.slane %v344_v32, 1  ;;  %v351_v27 = vrot.slane %v350_v42, 1 }
  0xa4   :  { %v357_v2 = vrot.slane %v356_v10, 1  ;;  %v363_v49 = vrot.slane %v362_v34, 1  ;;  %v369_v13 = vrot.slane %v368_v35, 1  ;;  %v375_v28 = vrot.slane %v374_v22, 1 }
  0xa5   :  { %v381_v11 = vrot.slane %v380_v52, 1  ;;  %v387_v31 = vrot.slane %v386_v60, 1  ;;  %v346_v4 = vadd.f32 %v345_v37, %v344_v32  ;;  %v352_v0 = vadd.f32 %v351_v27, %v350_v42  ;;  %v1492_v42 = vld [vmem:[#allocation12_spill] sm:$0xff] }
  0xa6   :  { %v358_v62 = vadd.f32 %v357_v2, %v356_v10  ;;  %v364_v3 = vadd.f32 %v363_v49, %v362_v34  ;;  %v370_v21 = vadd.f32 %v369_v13, %v368_v35  ;;  %v376_v33 = vadd.f32 %v375_v28, %v374_v22  ;;  %v1505_v49 = vld [vmem:[#allocation9_spill] sm:$0xff] }
  0xa7   :  { %v382_v45 = vadd.f32 %v381_v11, %v380_v52  ;;  %v388_v19 = vadd.f32 %v387_v31, %v386_v60  ;;  %v437_v50 = vmul.f32 %v1180_v43, %v346_v4  ;;  %v438_v27 = vmul.f32 %v1182_v44, %v352_v0  ;;  %v1507_v0 = vld [vmem:[#allocation10_spill] sm:$0xff] }
  0xa8   :  { %v439_v2 = vmul.f32 %v1184_v46, %v358_v62  ;;  %v440_v57 = vmul.f32 %v1186_v47, %v364_v3  ;;  %v441_v28 = vmul.f32 %v1188_v15, %v370_v21  ;;  %v442_v31 = vmul.f32 %v1190_v54, %v376_v33  ;;  %v1508_v3 = vld [vmem:[#allocation11_spill] sm:$0xff] }
  0xa9   :  { %v443_v11 = vmul.f32 %v1192_v55, %v382_v45  ;;  %v444_v39 = vmul.f32 %v1194_v56, %v388_v19  ;;  %v445_v43 = vsub.f32 0.0, %v437_v50  ;;  %v446_v44 = vsub.f32 0.0, %v438_v27 }
  0xaa   :  { %v447_v46 = vsub.f32 0.0, %v439_v2  ;;  %v448_v47 = vsub.f32 0.0, %v440_v57  ;;  %v449_v15 = vsub.f32 0.0, %v441_v28  ;;  %v450_v54 = vsub.f32 0.0, %v442_v31 }
  0xab   :  { %v451_v6 = vsub.f32 0.0, %v443_v11  ;;  %v452_v55 = vsub.f32 0.0, %v444_v39  ;;  %v453_v56 = vmul.f32 %v445_v43, %v1093_v63  ;;  %v454_v9 = vmul.f32 %v446_v44, %v1095_v8 }
  0xac   :  { %v455_v14 = vmul.f32 %v447_v46, %v1097_v18  ;;  %v456_v1 = vmul.f32 %v448_v47, %v1099_v23  ;;  %vm1491_vm0 = vnez %v1486_v5  ;;  %v457_v59 = vmul.f32 %v449_v15, %v1101_v24  ;;  %v603_v5 = vld [vmem:[#allocation2 + $0x6] sm:$0x3] }
  0xad   :  { %vm599_vm13 = vmand %vm1491_vm0, %vm1490_vm14  ;;  %v458_v61 = vmul.f32 %v450_v54, %v1104_v26  ;;  %v459_v32 = vmul.f32 %v451_v6, %v1107_v29  ;;  %v460_v10 = vmul.f32 %v452_v55, %v1492_v42  ;;  %v604_v63 = vsel %vm1493_vm6, %v453_v56, 0.0 }
  0xae   :  { %v605_v8 = vsel %vm1494_vm15, %v454_v9, 0.0  ;;  %vm1495_vm0 = vmand %vm1228_vm3, %vm1232_vm4  ;;  %vm1496_vm14 = vnez %v1471_v53  ;;  %v608_v24 = vsel %vm1498_vm10, %v457_v59, 0.0  ;;  %vm1499_vm11 = vnez %v1479_v17  ;;  %v601_v17 = vld [vmem:[#allocation2 + $0x2] sm:$0x3] }
  0xaf   :  { %v606_v18 = vsel %vm1495_vm0, %v455_v14, 0.0  ;;  %vm1497_vm9 = vmand %vm1239_vm5, %vm1496_vm14  ;;  %vm1501_vm2 = vnez %v1481_v7  ;;  %vm1502_vm3 = vnez %v1483_v48  ;;  %v611_v25 = vsel %vm599_vm13, %v460_v10, 0.0  ;;  %v602_v7 = vld [vmem:[#allocation2 + $0x4] sm:$0x3] }
  0xb0   :  { %v607_v23 = vsel %vm1497_vm9, %v456_v1, 0.0  ;;  %vm1500_vm1 = vmand %vm1258_vm12, %vm1499_vm11  ;;  %v620_v58 = vcombine.low %v604_v63, %v605_v8  ;;  %vm1506_vm5 = vnez %v1505_v49  ;;  %vm747_vm6 = vcmask 1040384  }
  0xb1   :  { %v609_v26 = vsel %vm1500_vm1, %v458_v61, 0.0  ;;  %vm1503_vm4 = vmand %vm1501_vm2, %vm1502_vm3  ;;  %v635_v51 = vcombine.low %v606_v18, %v607_v23  ;;  %vm773_vm7 = vcmask 0  }
  0xb2   :  { %v610_v29 = vsel %vm1503_vm4, %v459_v32, 0.0  ;;  %v650_v30 = vcombine.low %v608_v24, %v609_v26  ;;  %v627_v53 = vrot.slane %v620_v58, %v1504_v38 }
  0xb3   :  { %v665_v12 = vcombine.low %v610_v29, %v611_v25  ;;  %v642_v40 = vrot.slane %v635_v51, %v1504_v38 }
  0xb4   :  { %v657_v36 = vrot.slane %v650_v30, %v1504_v38  ;;  %v634_v48 = vrot.slane %v627_v53, %v1504_v38 }
  0xb5   :  { %v672_v41 = vrot.slane %v665_v12, %v1504_v38  ;;  %v649_v20 = vrot.slane %v642_v40, %v1504_v38 }
  0xb6   :  { %v664_v34 = vrot.slane %v657_v36, %v1504_v38  ;;  %v684_v22 = vadd.f32 %v634_v48, %v600_v16 }
  0xb7   :  { %v679_v35 = vrot.slane %v672_v41, %v1504_v38  ;;  %v685_v52 = vadd.f32 %v649_v20, %v601_v17 }
  0xb8   :  { %v686_v60 = vadd.f32 %v664_v34, %v602_v7  ;;  %692 = vst.msk [vmem:[#allocation2] sm:$0x3] %vm1506_vm5, %v684_v22 }
  0xb9   :  { %v687_v37 = vadd.f32 %v679_v35, %v603_v5  ;;  %693 = vst.msk [vmem:[#allocation2 + $0x2] sm:$0x3] %vm1506_vm5, %v685_v52 }
  0xba   :  { %694 = vst.msk [vmem:[#allocation2 + $0x4] sm:$0x3] %vm1506_vm5, %v686_v60 }
  0xbb   :  { %695 = vst.msk [vmem:[#allocation2 + $0x6] sm:$0x3] %vm1506_vm5, %v687_v37 }
  0xbf   :  { %v699_v13 = vld [vmem:[#allocation2] sm:$0x3] }
  0xc0   :  { %v700_v4 = vld [vmem:[#allocation2 + $0x2] sm:$0x3]  ;;  %v710_v62 = vrot.slane %v699_v13, %v1507_v0  ;;  %v714_v21 = vrot.slane %v699_v13, %v1508_v3 }
  0xc1   :  { %v718_v33 = vrot.slane %v700_v4, %v1507_v0  ;;  %v701_v45 = vld [vmem:[#allocation2 + $0x4] sm:$0x3]  ;;  %v722_v19 = vrot.slane %v700_v4, %v1508_v3 }
  0xc2   :  { %v748_v50 = vsel %vm747_vm6, %v710_v62, 0.0  ;;  %v749_v27 = vsel %vm747_vm6, %v714_v21, 0.0  ;;  %v726_v57 = vrot.slane %v701_v45, %v1507_v0  ;;  %v702_v31 = vld [vmem:[#allocation2 + $0x6] sm:$0x3]  ;;  %v730_v39 = vrot.slane %v701_v45, %v1508_v3 }
  0xc3   :  { %v750_v2 = vadd.f32 %v749_v27, %v748_v50  ;;  %v751_v28 = vsel %vm747_vm6, %v718_v33, 0.0  ;;  %v753_v43 = vsel %vm747_vm6, %v722_v19, 0.0  ;;  %v734_v46 = vrot.slane %v702_v31, %v1507_v0 }
  0xc4   :  { %v755_v47 = vsel %vm747_vm6, %v726_v57, 0.0  ;;  %v738_v54 = vrot.slane %v702_v31, %v1508_v3  ;;  %v757_v6 = vsel %vm747_vm6, %v730_v39, 0.0 }
  0xc5   :  { %v752_v11 = vadd.f32 %v751_v28, %v750_v2  ;;  %v759_v56 = vsel %vm747_vm6, %v734_v46, 0.0 }
  0xc6   :  { %v761_v14 = vsel %vm747_vm6, %v738_v54, 0.0 }
  0xc7   :  { %v754_v44 = vadd.f32 %v753_v43, %v752_v11 }
  0xc9   :  { %v756_v15 = vadd.f32 %v755_v47, %v754_v44 }
  0xcb   :  { %v758_v55 = vadd.f32 %v757_v6, %v756_v15 }
  0xcd   :  { %v760_v9 = vadd.f32 %v759_v56, %v758_v55 }
  0xcf   :  { %v762_v1 = vadd.f32 %v761_v14, %v760_v9 }
  0xd1   :  { %763 = vadd.xlane.f32.xlu0 %v762_v1 }
 0x15e   :  { %v764_v59 = vpop.xlane.xlu0 %763 }
 0x15f   :  { %v765_v61 = vrot.slane %v764_v59, 4 }
 0x161   :  { %v766_v32 = vadd.f32 %v765_v61, %v764_v59 }
 0x163   :  { %v767_v42 = vrot.slane %v766_v32, 2 }
 0x165   :  { %v768_v10 = vadd.f32 %v767_v42, %v766_v32 }
 0x167   :  { %v769_v63 = vrot.slane %v768_v10, 1 }
 0x169   :  { %v770_v8 = vadd.f32 %v769_v63, %v768_v10 }
 0x16b   :  { %798 = vpush %v770_v8 }
 0x19c   :  { %s799_s8 = spop %798 }
 0x19d   :  { %v772_v18 = vstv %s799_s8 }
 0x19e   :  { %774 = vst.msk [vmem:[#allocation6] sm:$0x1] %vm773_vm7, %v772_v18 }
 0x19f   :  { %889 = shalt.err (!%p886_p12)
}
 0x1a0   :  { %s890_s13 = scalar_lea.hbm %s1418_s3, 16 }
 0x1a1   :  { %p891_p13 = scmp.ne.s32.totalorder %s1418_s3, %s890_s13  ;;  %p894_p0 = scmp.lt.u32.totalorder %s890_s13, %s1418_s3 }
 0x1a3   :  { %p896_p1 = pnand %p894_p0, %p891_p13 }
 0x1a5   :  { %899 = shalt.err (!%p896_p1)
}
 0x1a6   :  { %787 = dma.vmem_to_hbm [thread:$0]  %s785_s7, 16, %s1418_s3, [#allocation5]  }
 0x1a7   :  { %902 = dma.done.wait [#allocation5], 16  }
 0x1a8   :  { %903 = vsyncadd [#allocation5], 4294967280 }
 0x1a9   :  { %791 = vsyncpa [#allocation4], 1 }
 0x1aa   :  { %792 = vsyncpa [#allocation5], 1 }

</bundles_post_ra>
